<compile_context>
chip_gen: v7x
topology: tpu7x:2x2x1
jax: 0.10.0
libtpu: 0.0.40
codegen_flags: <defaults>
</compile_context>

<pallas_src>
import functools

import jax
import jax.numpy as jnp
from jax.experimental import pallas as pl
from jax.experimental.pallas import tpu as pltpu


def model_kernel(x_ref, wft_ref, bf_ref, wh_ref, bh_ref, o_ref, acc_ref, *,
                 inv_hw, t_b):
    # x_ref  : (t_B, C, T_HW) bf16/f32  spatial tile of t_B batch elements (HW on lanes)
    # wft_ref: (F, C)                   foot weight, pre-transposed (resident)
    # bf_ref : (F, 1)  f32              foot bias (broadcasts over lanes)
    # wh_ref : (F, O)  f32              head weight (resident)
    # bh_ref : (1, O)  f32              head bias (resident)
    # o_ref  : (t_B, 1, O)              per-batch-block output (resident across HW tiles)
    # acc_ref: (t_B, F, 1) f32          running spatial sum of relu(foot(x))
    s = pl.program_id(1)

    @pl.when(s == 0)
    def _init():
        acc_ref[...] = jnp.zeros_like(acc_ref)

    wft = wft_ref[...]                                      # (F, C)
    bf = bf_ref[...]                                        # (F, 1)

    # Statically unrolled over the batch block: each iteration is a plain 2-D
    # MXU matmul (F, C) @ (C, T_HW) with f32 accumulation, bias + ReLU fused,
    # followed by a lane reduce. The grid-step DMA covers all t_B slabs at once.
    for b in range(t_b):
        xb = x_ref[b]                                       # (C, T_HW)
        feat = jnp.dot(wft, xb, preferred_element_type=jnp.float32)
        feat = jnp.maximum(feat + bf, 0.0)                  # (F, T_HW)
        acc_ref[b] += jnp.sum(feat, axis=1, keepdims=True)  # (F, 1)

    @pl.when(s == pl.num_programs(1) - 1)
    def _finalize():
        pooled = acc_ref[...] * inv_hw                      # (t_B, F, 1) spatial mean
        # head: Linear(F, O). F/O are tiny -> broadcast multiply + sublane
        # reduce on the VPU (exact f32, no extra MXU drain needed).
        out = jnp.sum(pooled * wh_ref[...], axis=1, keepdims=True) + bh_ref[...]
        o_ref[...] = out.astype(o_ref.dtype)                # (t_B, 1, O)


# Per-x-input VMEM buffer budget. Pallas double-buffers inputs, so the x stream
# uses ~2x this; with the explicit 32 MiB vmem_limit below this is safe on
# v5e/v6e (128 MiB physical) and v7x (64 MiB physical).
_X_BUF_BUDGET = 8 * 1024 * 1024
_MAX_TB = 8   # cap on per-step batch blocking (bounds in-kernel unroll size)


def _pick_tiles(batch, c, hw, itemsize):
    """Return (t_B, t_HW): batch-block and lane-dense spatial-tile sizes."""
    slab = c * hw * itemsize                    # one batch element's (C, HW) slab
    if slab <= _X_BUF_BUDGET:
        # Collapse the spatial grid entirely; block several batch elements per
        # step so each grid step moves a large contiguous chunk of HBM.
        t_b = 1
        for cand in range(min(batch, _MAX_TB), 0, -1):
            if batch % cand == 0 and cand * slab <= _X_BUF_BUDGET:
                t_b = cand
                break
        return t_b, hw
    if hw % 128 == 0:
        # Slab too large for one step: stream lane-dense spatial tiles, largest
        # multiple of 128 dividing HW that fits the budget.
        cap = max(128, (_X_BUF_BUDGET // (c * itemsize)) // 128 * 128)
        cap = min(cap, hw)
        t_hw = 128
        for cand in range(cap, 127, -128):
            if hw % cand == 0:
                t_hw = cand
                break
        return 1, t_hw
    # TODO(synk): HW not a multiple of 128 and the slab exceeds the VMEM budget;
    # falling back to a single full-HW block (may exceed the scoped VMEM limit).
    return 1, hw


def model_forward(x_nchw, w_foot, b_foot, w_head, b_head, *,
                  stream_dtype=jnp.bfloat16):
    """x_nchw: [B, C, H, W] (PyTorch layout). Returns [B, output_size] float32."""
    B, C, H, W = x_nchw.shape
    F = w_foot.shape[1]
    O = w_head.shape[1]
    HW = H * W

    # Consume NCHW directly: (B, C, H, W) -> (B, C, HW) is a free reshape; HW
    # becomes the lane axis inside the kernel. x and Wf stream in bf16 (HBM-bound),
    # accumulation stays f32.
    x = x_nchw.reshape(B, C, HW).astype(stream_dtype)
    wf_t = jnp.transpose(w_foot).astype(stream_dtype)       # (F, C) tiny one-time transpose
    bf = b_foot.reshape(F, 1).astype(jnp.float32)
    wh = w_head.astype(jnp.float32)
    bh = b_head.reshape(1, O).astype(jnp.float32)

    itemsize = jnp.dtype(stream_dtype).itemsize
    t_b, t_hw = _pick_tiles(B, C, HW, itemsize)
    num_s = HW // t_hw
    grid = (B // t_b, num_s)                                 # reduction (HW) axis last

    # Deeper input buffering only helps when per-tile compute is tiny and the
    # spatial grid could not be collapsed.
    x_spec_kwargs = {}
    if num_s >= 4 and t_b * C * t_hw * itemsize <= 512 * 1024:
        x_spec_kwargs["pipeline_mode"] = pl.Buffered(3)
    x_spec = pl.BlockSpec((t_b, C, t_hw), lambda bb, s: (bb, 0, s), **x_spec_kwargs)

    kernel = functools.partial(model_kernel, inv_hw=float(1.0 / HW), t_b=t_b)

    out3 = pl.pallas_call(
        kernel,
        out_shape=jax.ShapeDtypeStruct((B, 1, O), jnp.float32),
        grid_spec=pltpu.PrefetchScalarGridSpec(
            num_scalar_prefetch=0,
            grid=grid,
            in_specs=[
                x_spec,                                             # stream x
                pl.BlockSpec((F, C), lambda bb, s: (0, 0)),         # resident Wf^T
                pl.BlockSpec((F, 1), lambda bb, s: (0, 0)),         # resident bf
                pl.BlockSpec((F, O), lambda bb, s: (0, 0)),         # resident Wh
                pl.BlockSpec((1, O), lambda bb, s: (0, 0)),         # resident bh
            ],
            out_specs=pl.BlockSpec((t_b, 1, O), lambda bb, s: (bb, 0, 0)),
            scratch_shapes=[pltpu.VMEM((t_b, F, 1), jnp.float32)],
        ),
        compiler_params=pltpu.CompilerParams(
            dimension_semantics=("parallel", "arbitrary"),
            vmem_limit_bytes=32 * 1024 * 1024,
        ),
    )(x, wf_t, bf, wh, bh)

    return out3.reshape(B, O)


if __name__ == "__main__":
    # Small shapes consistent with ModelBase defaults / a tiny concrete model.
    B, C, H, W = 2, 4, 16, 16          # input_channel = 4
    FEATURE_DIM = 32                   # self.feature_dim
    OUTPUT_SIZE = 1                    # output_size default = 1

    key = jax.random.PRNGKey(0)
    kx, kwf, kbf, kwh, kbh = jax.random.split(key, 5)

    x = jax.random.normal(kx, (B, C, H, W), dtype=jnp.float32)

    # Deterministic synthetic parameters (shapes from __init__ / forward).
    w_foot = jax.random.normal(kwf, (C, FEATURE_DIM), dtype=jnp.float32) * 0.1
    b_foot = jax.random.normal(kbf, (FEATURE_DIM,), dtype=jnp.float32) * 0.1
    w_head = jax.random.normal(kwh, (FEATURE_DIM, OUTPUT_SIZE), dtype=jnp.float32) * 0.1
    b_head = jax.random.normal(kbh, (OUTPUT_SIZE,), dtype=jnp.float32) * 0.1

    out = model_forward(x, w_foot, b_foot, w_head, b_head)
    out = jax.block_until_ready(out)

    # Matched-precision reference: same bf16 quantization of x / foot weight,
    # f32 accumulation everywhere else (mirrors the kernel's compute path).
    xq = x.astype(jnp.bfloat16).astype(jnp.float32)
    wfq = w_foot.astype(jnp.bfloat16).astype(jnp.float32)
    feat_ref = jnp.maximum(
        jnp.einsum("bchw,cf->bhwf", xq, wfq,
                   precision=jax.lax.Precision.HIGHEST) + b_foot, 0.0)
    pooled_ref = jnp.mean(feat_ref, axis=(1, 2))
    ref = jnp.sum(pooled_ref[:, :, None] * w_head[None, :, :], axis=1) + b_head

    # Loose sanity check against the full-f32 forward (bounds the bf16 streaming error).
    feat32 = jnp.maximum(
        jnp.einsum("bchw,cf->bhwf", x, w_foot,
                   precision=jax.lax.Precision.HIGHEST) + b_foot, 0.0)
    ref32 = jnp.mean(feat32, axis=(1, 2)) @ w_head + b_head

    assert out.shape == (B, OUTPUT_SIZE)
    assert jnp.allclose(out, ref, atol=1e-4), (out, ref)
    assert jnp.allclose(out, ref32, atol=5e-2), (out, ref32)

    print("KERNEL_OK")
</pallas_src>

<mosaic_0001>
module attributes {stable_mosaic.version = 11 : i64} {
  func.func @model_kernel(%arg0: i32, %arg1: i32, %arg2: memref<2x4x256xbf16, #tpu.memory_space<vmem>>, %arg3: memref<32x4xbf16, #tpu.memory_space<vmem>>, %arg4: memref<32x1xf32, #tpu.memory_space<vmem>>, %arg5: memref<32x1xf32, #tpu.memory_space<vmem>>, %arg6: memref<1x1xf32, #tpu.memory_space<vmem>>, %arg7: memref<2x1x1xf32, #tpu.memory_space<vmem>>, %arg8: memref<2x32x1xf32, #tpu.memory_space<vmem>>) attributes {dimension_semantics = [#tpu.dimension_semantics<parallel>, #tpu.dimension_semantics<arbitrary>], iteration_bounds = array<i64: 1, 1>, scalar_prefetch = 0 : i64, scratch_operands = 1 : i64, tpu.core_type = #tpu.core_type<tc>, window_params = [{transform_indices = @transform_0, window_bounds = array<i64: 2, 4, 256>}, {pipeline_mode = #tpu.pipeline_mode<synchronous>, transform_indices = @transform_1, window_bounds = array<i64: 32, 4>}, {pipeline_mode = #tpu.pipeline_mode<synchronous>, transform_indices = @transform_2, window_bounds = array<i64: 32, 1>}, {pipeline_mode = #tpu.pipeline_mode<synchronous>, transform_indices = @transform_3, window_bounds = array<i64: 32, 1>}, {pipeline_mode = #tpu.pipeline_mode<synchronous>, transform_indices = @transform_4, window_bounds = array<i64: 1, 1>}, {transform_indices = @transform_5, window_bounds = array<i64: 2, 1, 1>}]} {
    %c0_i32 = arith.constant 0 : i32
    %0 = arith.cmpi eq, %arg1, %c0_i32 : i32
    %1 = arith.extui %0 : i1 to i32
    %c0_i32_0 = arith.constant 0 : i32
    %2 = arith.cmpi ne, %1, %c0_i32_0 : i32
    scf.if %2 {
      %cst_28 = arith.constant 0.000000e+00 : f32
      %38 = vector.broadcast %cst_28 : f32 to vector<2x32x1xf32>
      %c0_29 = arith.constant 0 : index
      %c0_30 = arith.constant 0 : index
      %c0_31 = arith.constant 0 : index
      %39 = vector.load %arg8[%c0_29, %c0_30, %c0_31] : memref<2x32x1xf32, #tpu.memory_space<vmem>>, vector<2x32x1xf32>
      tpu.vector_store %arg8[%c0_29, %c0_30, %c0_31], %38 {strides = array<i32>} : memref<2x32x1xf32, #tpu.memory_space<vmem>>, vector<2x32x1xf32>,
    } else {
    }
    %c0 = arith.constant 0 : index
    %c0_1 = arith.constant 0 : index
    %3 = vector.load %arg3[%c0, %c0_1] : memref<32x4xbf16, #tpu.memory_space<vmem>>, vector<32x4xbf16>
    %c0_2 = arith.constant 0 : index
    %c0_3 = arith.constant 0 : index
    %4 = vector.load %arg4[%c0_2, %c0_3] : memref<32x1xf32, #tpu.memory_space<vmem>>, vector<32x1xf32>
    %c0_4 = arith.constant 0 : index
    %c0_5 = arith.constant 0 : index
    %c0_6 = arith.constant 0 : index
    %5 = vector.load %arg2[%c0_4, %c0_5, %c0_6] : memref<2x4x256xbf16, #tpu.memory_space<vmem>>, vector<1x4x256xbf16>
    %6 = vector.shape_cast %5 : vector<1x4x256xbf16> to vector<4x256xbf16>
    %cst = arith.constant dense<0.000000e+00> : vector<32x256xf32>
    %7 = tpu.matmul %3, %6, %cst {dimension_numbers = #tpu.dot_dimension_numbers<[1], [0], [0], [1], [0, 0, 1, 1], [], []>} : vector<32x4xbf16>, vector<4x256xbf16>, vector<32x256xf32> -> vector<32x256xf32>
    %8 = vector.broadcast %4 : vector<32x1xf32> to vector<32x256xf32>
    %9 = arith.addf %7, %8 : vector<32x256xf32>
    %cst_7 = arith.constant 0.000000e+00 : f32
    %10 = vector.broadcast %cst_7 : f32 to vector<32x256xf32>
    %11 = arith.maximumf %9, %10 : vector<32x256xf32>
    %c0_8 = arith.constant 0 : index
    %c0_9 = arith.constant 0 : index
    %c0_10 = arith.constant 0 : index
    %12 = vector.load %arg8[%c0_8, %c0_9, %c0_10] : memref<2x32x1xf32, #tpu.memory_space<vmem>>, vector<1x32x1xf32>
    %13 = vector.shape_cast %12 : vector<1x32x1xf32> to vector<32x1xf32>
    %cst_11 = arith.constant dense<0.000000e+00> : vector<32xf32>
    %14 = vector.multi_reduction <add>, %11, %cst_11 [1] : vector<32x256xf32> to vector<32xf32>
    %15 = vector.shape_cast %14 : vector<32xf32> to vector<32x1xf32>
    %16 = arith.addf %13, %15 : vector<32x1xf32>
    %c0_12 = arith.constant 0 : index
    %c0_13 = arith.constant 0 : index
    %c0_14 = arith.constant 0 : index
    %17 = vector.load %arg8[%c0_12, %c0_13, %c0_14] : memref<2x32x1xf32, #tpu.memory_space<vmem>>, vector<1x32x1xf32>
    %18 = vector.shape_cast %17 : vector<1x32x1xf32> to vector<32x1xf32>
    %19 = vector.shape_cast %16 : vector<32x1xf32> to vector<1x32x1xf32>
    tpu.vector_store %arg8[%c0_12, %c0_13, %c0_14], %19 {strides = array<i32>} : memref<2x32x1xf32, #tpu.memory_space<vmem>>, vector<1x32x1xf32>,
    %c1 = arith.constant 1 : index
    %c0_15 = arith.constant 0 : index
    %c0_16 = arith.constant 0 : index
    %20 = vector.load %arg2[%c1, %c0_15, %c0_16] : memref<2x4x256xbf16, #tpu.memory_space<vmem>>, vector<1x4x256xbf16>
    %21 = vector.shape_cast %20 : vector<1x4x256xbf16> to vector<4x256xbf16>
    %cst_17 = arith.constant dense<0.000000e+00> : vector<32x256xf32>
    %22 = tpu.matmul %3, %21, %cst_17 {dimension_numbers = #tpu.dot_dimension_numbers<[1], [0], [0], [1], [0, 0, 1, 1], [], []>} : vector<32x4xbf16>, vector<4x256xbf16>, vector<32x256xf32> -> vector<32x256xf32>
    %23 = vector.broadcast %4 : vector<32x1xf32> to vector<32x256xf32>
    %24 = arith.addf %22, %23 : vector<32x256xf32>
    %cst_18 = arith.constant 0.000000e+00 : f32
    %25 = vector.broadcast %cst_18 : f32 to vector<32x256xf32>
    %26 = arith.maximumf %24, %25 : vector<32x256xf32>
    %c1_19 = arith.constant 1 : index
    %c0_20 = arith.constant 0 : index
    %c0_21 = arith.constant 0 : index
    %27 = vector.load %arg8[%c1_19, %c0_20, %c0_21] : memref<2x32x1xf32, #tpu.memory_space<vmem>>, vector<1x32x1xf32>
    %28 = vector.shape_cast %27 : vector<1x32x1xf32> to vector<32x1xf32>
    %cst_22 = arith.constant dense<0.000000e+00> : vector<32xf32>
    %29 = vector.multi_reduction <add>, %26, %cst_22 [1] : vector<32x256xf32> to vector<32xf32>
    %30 = vector.shape_cast %29 : vector<32xf32> to vector<32x1xf32>
    %31 = arith.addf %28, %30 : vector<32x1xf32>
    %c1_23 = arith.constant 1 : index
    %c0_24 = arith.constant 0 : index
    %c0_25 = arith.constant 0 : index
    %32 = vector.load %arg8[%c1_23, %c0_24, %c0_25] : memref<2x32x1xf32, #tpu.memory_space<vmem>>, vector<1x32x1xf32>
    %33 = vector.shape_cast %32 : vector<1x32x1xf32> to vector<32x1xf32>
    %34 = vector.shape_cast %31 : vector<32x1xf32> to vector<1x32x1xf32>
    tpu.vector_store %arg8[%c1_23, %c0_24, %c0_25], %34 {strides = array<i32>} : memref<2x32x1xf32, #tpu.memory_space<vmem>>, vector<1x32x1xf32>,
    %c0_i32_26 = arith.constant 0 : i32
    %35 = arith.cmpi eq, %arg1, %c0_i32_26 : i32
    %36 = arith.extui %35 : i1 to i32
    %c0_i32_27 = arith.constant 0 : i32
    %37 = arith.cmpi ne, %36, %c0_i32_27 : i32
    scf.if %37 {
      %c0_28 = arith.constant 0 : index
      %c0_29 = arith.constant 0 : index
      %c0_30 = arith.constant 0 : index
      %38 = vector.load %arg8[%c0_28, %c0_29, %c0_30] : memref<2x32x1xf32, #tpu.memory_space<vmem>>, vector<2x32x1xf32>
      %cst_31 = arith.constant 3.906250e-03 : f32
      %39 = vector.broadcast %cst_31 : f32 to vector<2x32x1xf32>
      %40 = arith.mulf %38, %39 : vector<2x32x1xf32>
      %c0_32 = arith.constant 0 : index
      %c0_33 = arith.constant 0 : index
      %41 = vector.load %arg5[%c0_32, %c0_33] : memref<32x1xf32, #tpu.memory_space<vmem>>, vector<32x1xf32>
      %42 = vector.shape_cast %41 : vector<32x1xf32> to vector<1x32x1xf32>
      %43 = vector.broadcast %42 : vector<1x32x1xf32> to vector<2x32x1xf32>
      %44 = arith.mulf %40, %43 : vector<2x32x1xf32>
      %cst_34 = arith.constant dense<0.000000e+00> : vector<2x1xf32>
      %45 = vector.multi_reduction <add>, %44, %cst_34 [1] : vector<2x32x1xf32> to vector<2x1xf32>
      %46 = vector.shape_cast %45 : vector<2x1xf32> to vector<2x1x1xf32>
      %c0_35 = arith.constant 0 : index
      %c0_36 = arith.constant 0 : index
      %47 = vector.load %arg6[%c0_35, %c0_36] : memref<1x1xf32, #tpu.memory_space<vmem>>, vector<1x1xf32>
      %48 = vector.shape_cast %47 : vector<1x1xf32> to vector<1x1x1xf32>
      %49 = vector.broadcast %48 : vector<1x1x1xf32> to vector<2x1x1xf32>
      %50 = arith.addf %46, %49 : vector<2x1x1xf32>
      %c0_37 = arith.constant 0 : index
      %c0_38 = arith.constant 0 : index
      %c0_39 = arith.constant 0 : index
      %51 = vector.load %arg7[%c0_37, %c0_38, %c0_39] : memref<2x1x1xf32, #tpu.memory_space<vmem>>, vector<2x1x1xf32>
      tpu.vector_store %arg7[%c0_37, %c0_38, %c0_39], %50 {strides = array<i32>} : memref<2x1x1xf32, #tpu.memory_space<vmem>>, vector<2x1x1xf32>,
    } else {
    }
    return
  }
  func.func @transform_0(%arg0: i32, %arg1: i32) -> (i32, i32, i32) {
    %c0_i32 = arith.constant 0 : i32
    %c0_i32_0 = arith.constant 0 : i32
    return %arg0, %c0_i32, %arg1 : i32, i32, i32
  }
  func.func @transform_1(%arg0: i32, %arg1: i32) -> (i32, i32) {
    %c0_i32 = arith.constant 0 : i32
    %c0_i32_0 = arith.constant 0 : i32
    %c0_i32_1 = arith.constant 0 : i32
    return %c0_i32, %c0_i32_0 : i32, i32
  }
  func.func @transform_2(%arg0: i32, %arg1: i32) -> (i32, i32) {
    %c0_i32 = arith.constant 0 : i32
    %c0_i32_0 = arith.constant 0 : i32
    %c0_i32_1 = arith.constant 0 : i32
    return %c0_i32, %c0_i32_0 : i32, i32
  }
  func.func @transform_3(%arg0: i32, %arg1: i32) -> (i32, i32) {
    %c0_i32 = arith.constant 0 : i32
    %c0_i32_0 = arith.constant 0 : i32
    %c0_i32_1 = arith.constant 0 : i32
    return %c0_i32, %c0_i32_0 : i32, i32
  }
  func.func @transform_4(%arg0: i32, %arg1: i32) -> (i32, i32) {
    %c0_i32 = arith.constant 0 : i32
    %c0_i32_0 = arith.constant 0 : i32
    %c0_i32_1 = arith.constant 0 : i32
    return %c0_i32, %c0_i32_0 : i32, i32
  }
  func.func @transform_5(%arg0: i32, %arg1: i32) -> (i32, i32, i32) {
    %c0_i32 = arith.constant 0 : i32
    %c0_i32_0 = arith.constant 0 : i32
    %c0_i32_1 = arith.constant 0 : i32
    return %arg0, %c0_i32, %c0_i32_0 : i32, i32, i32
  }
}

</mosaic_0001>

<bundles_post_ra>
// kernel: tpu_custom_call.1
= control target key start
LH: loop header
LB: loop body
LE: loop exit
PB: predicated region body
PF: predicated region fallthrough
CT: control target
= control target key end

     0   :  { %vm91_vm0 = vcmask 1041408   ;;  %v371_v1 = vmov 0   ;;  %vm84_vm1 = vcmask 31744   ;;  %vm27_vm2 = vcmask 7168   ;;  %s476_s0 = inlined_call_operand.vmem [shape: bf16[2,4,256], index: 0, kind: input, shape index: {}]   ;;  %s477_s1 = inlined_call_operand.vmem [shape: bf16[32,4], index: 1, kind: input, shape index: {}]   ;;  %s478_s2 = inlined_call_operand.vmem [shape: f32[32,1], index: 2, kind: input, shape index: {}]   ;;  %s479_s4 = inlined_call_operand.<no memory space> [shape: f32[1,1], index: 4, kind: input, shape index: {}]   ;;  %s480_s3 = inlined_call_operand.vmem [shape: f32[32,1], index: 3, kind: input, shape index: {}]   ;;  %s481_s5 = inlined_call_operand.vmem [shape: f32[2,1,1], index: 5, kind: output, shape index: {}]  }
   0x1   :  { %v356_v0 = vld.sshfl [vmem:[%s476_s0] sm:$0x33 pattern:$0x76325410]  ;;  %130 = vmatprep.mubr.bf16.mxu0 %v371_v1  ;;  %233 = vmatprep.mubr.bf16.mxu1 %v371_v1  ;;  %v42_v9 = vld [vmem:[%s478_s2 + $0x10] sm:$0xff]  ;;  %v41_v10 = vld [vmem:[%s478_s2 + $0x8] sm:$0xff] }
   0x2   :  { %v83_v2 = vcombine.high %v356_v0, %v356_v0  ;;  %v361_v3 = vld.sshfl [vmem:[%s476_s0 + $0x4] sm:$0x33 pattern:$0x76325410]  ;;  %v93_v4 = vsel %vm91_vm0, %v356_v0, 0  ;;  %367 = vset.pattern.permute.xlu0 %v371_v1  ;;  %368 = vset.pattern.permute.xlu1 %v371_v1  ;;  %v43_v11 = vld [vmem:[%s478_s2 + $0x18] sm:$0xff] }
   0x3   :  { %v194_v5 = vcombine.high %v361_v3, %v361_v3  ;;  %v196_v6 = vsel %vm91_vm0, %v361_v3, 0  ;;  %v369_v7 = vld [vmem:[%s477_s1] sm:$0xff]   ;;  %57 = vperm.xlu1 %368, %v42_v9   ;;  %v370_v12 = vld [vmem:[%s477_s1 + $0x8] sm:$0xff]   ;;  %v372_v13 = vmov 0.0   ;;  %vm347_vm3 = vcmask 0  }
   0x4   :  { %357 = vmatprep.subr.msk.bf16.mxu0 %vm91_vm0, %v83_v2  ;;  %v40_v8 = vld [vmem:[%s478_s2] sm:$0xff]  ;;  %28 = vst.msk [vmem:[#allocation2] sm:$0xff] %vm27_vm2, %v372_v13  ;;  %29 = vst.msk [vmem:[#allocation2 + $0x8] sm:$0xff] %vm27_vm2, %v372_v13 }
   0x5   :  { %362 = vmatprep.subr.msk.bf16.mxu1 %vm91_vm0, %v194_v5  ;;  %99 = vmatpush1.bf16.msra.mxu0 %v93_v4  ;;  %30 = vst.msk [vmem:[#allocation2 + $0x10] sm:$0xff] %vm27_vm2, %v372_v13  ;;  %31 = vst.msk [vmem:[#allocation2 + $0x18] sm:$0xff] %vm27_vm2, %v372_v13 }
   0x6   :  { %202 = vmatpush1.bf16.msra.mxu1 %v196_v6  ;;  %47 = vperm.xlu0 %367, %v40_v8   ;;  %32 = vst.msk [vmem:[#allocation2 + $0x20] sm:$0xff] %vm27_vm2, %v372_v13  ;;  %33 = vst.msk [vmem:[#allocation2 + $0x28] sm:$0xff] %vm27_vm2, %v372_v13 }
   0x7   :  { %62 = vperm.xlu1 %368, %v43_v11   ;;  %34 = vst.msk [vmem:[#allocation2 + $0x30] sm:$0xff] %vm27_vm2, %v372_v13  ;;  %35 = vst.msk [vmem:[#allocation2 + $0x38] sm:$0xff] %vm27_vm2, %v372_v13 }
   0x8   :  { %358 = vmatmul.mubr.msk.bf16.vlgmr.msra.gmra.mrb[0].mxu0 %vm84_vm1, %v369_v7 }
   0x9   :  { %363 = vmatmul.mubr.msk.bf16.vlgmr.msra.gmra.mrb[0].mxu1 %vm84_vm1, %v369_v7  ;;  %140 = vmatprep.mubr.bf16.mxu0 %v371_v1 }
   0xa   :  { %243 = vmatprep.mubr.bf16.mxu1 %v371_v1  ;;  %52 = vperm.xlu0 %367, %v41_v10   ;;  %v10_v10 = vstv %s479_s4 }
   0xb   :  { %11 = vst [vmem:[#allocation3] sm:$0x1] %v10_v10  ;;  %v159_v11 = vld [vmem:[#allocation2] sm:$0xff]  ;;  %v160_v13 = vld [vmem:[#allocation2 + $0x8] sm:$0xff] }
  0x10   :  { %359 = vmatmul.mubr.msk.bf16.gmra.mrb[4].mxu0 %vm84_vm1, %v370_v12 }
  0x11   :  { %364 = vmatmul.mubr.msk.bf16.gmra.mrb[4].mxu1 %vm84_vm1, %v370_v12 }
  0x82   :  { %v58_v15 = vpop.permute.xlu1 %57 }
  0x85   :  { %v48_v14 = vpop.permute.xlu0 %47 }
  0x86   :  { %v63_v45 = vpop.permute.xlu1 %62 }
  0x89   :  { %v53_v17 = vpop.permute.xlu0 %52 }
  0xdb   :  { %v132_v16 = vpop.f32.mrb[0].mxu0 }
  0xdc   :  { %v133_v18 = vadd.f32 %v132_v16, %v48_v14  ;;  %v235_v19 = vpop.f32.mrb[0].mxu1  ;;  %v134_v20 = vpop.f32.mrb[1].mxu0  ;;  %v263_v16 = vld [vmem:[#allocation2 + $0x20] sm:$0xff] }
  0xdd   :  { %v236_v21 = vadd.f32 %v235_v19, %v48_v14  ;;  %v135_v22 = vadd.f32 %v134_v20, %v48_v14  ;;  %v237_v23 = vpop.f32.mrb[1].mxu1  ;;  %v136_v24 = vpop.f32.mrb[2].mxu0  ;;  %v161_v20 = vld [vmem:[#allocation2 + $0x10] sm:$0xff] }
  0xde   :  { %v151_v25 = vmax.f32 %v133_v18, 0.0  ;;  %v238_v26 = vadd.f32 %v237_v23, %v48_v14  ;;  %v137_v27 = vadd.f32 %v136_v24, %v53_v17  ;;  %v239_v28 = vpop.f32.mrb[2].mxu1  ;;  %v138_v29 = vpop.f32.mrb[3].mxu0 }
  0xdf   :  { %v254_v30 = vmax.f32 %v236_v21, 0.0  ;;  %v152_v31 = vmax.f32 %v135_v22, 0.0  ;;  %v240_v32 = vadd.f32 %v239_v28, %v53_v17  ;;  %v139_v33 = vadd.f32 %v138_v29, %v53_v17  ;;  %v241_v34 = vpop.f32.mrb[3].mxu1  ;;  %v264_v21 = vld [vmem:[#allocation2 + $0x28] sm:$0xff] }
  0xe0   :  { %v255_v35 = vmax.f32 %v238_v26, 0.0  ;;  %v153_v36 = vmax.f32 %v137_v27, 0.0  ;;  %v242_v37 = vadd.f32 %v241_v34, %v53_v17  ;;  %v162_v26 = vld [vmem:[#allocation2 + $0x18] sm:$0xff]  ;;  %v265_v27 = vld [vmem:[#allocation2 + $0x30] sm:$0xff] }
  0xe1   :  { %v256_v38 = vmax.f32 %v240_v32, 0.0  ;;  %v154_v39 = vmax.f32 %v139_v33, 0.0  ;;  %v163_v40 = vadd.f32 %v152_v31, %v151_v25 }
  0xe2   :  { %v257_v41 = vmax.f32 %v242_v37, 0.0  ;;  %v267_v42 = vadd.f32 %v255_v35, %v254_v30  ;;  %v266_v37 = vld [vmem:[#allocation2 + $0x38] sm:$0xff] }
  0xe3   :  { %v142_v43 = vpop.f32.mrb[4].mxu0  ;;  %164 = vadd.xlane.f32.xlu0 %v163_v40  ;;  %v166_v44 = vadd.f32 %v154_v39, %v153_v36  ;;  %v307_v36 = vld [vmem:[%s480_s3 + $0x8] sm:$0xff] }
  0xe4   :  { %v143_v46 = vadd.f32 %v142_v43, %v58_v15  ;;  %v144_v47 = vpop.f32.mrb[5].mxu0  ;;  %v245_v48 = vpop.f32.mrb[4].mxu1  ;;  %v270_v49 = vadd.f32 %v257_v41, %v256_v38  ;;  %v306_v38 = vld [vmem:[%s480_s3] sm:$0xff] }
  0xe5   :  { %v145_v50 = vadd.f32 %v144_v47, %v58_v15  ;;  %v246_v51 = vadd.f32 %v245_v48, %v58_v15  ;;  %v247_v52 = vpop.f32.mrb[5].mxu1  ;;  %167 = vadd.xlane.f32.xlu1 %v166_v44  ;;  %v146_v53 = vpop.f32.mrb[6].mxu0  ;;  %v308_v44 = vld [vmem:[%s480_s3 + $0x10] sm:$0xff] }
  0xe6   :  { %v155_v54 = vmax.f32 %v143_v46, 0.0  ;;  %v248_v55 = vadd.f32 %v247_v52, %v58_v15  ;;  %v249_v56 = vpop.f32.mrb[6].mxu1  ;;  %v148_v57 = vpop.f32.mrb[7].mxu0  ;;  %v147_v58 = vadd.f32 %v146_v53, %v63_v45 }
  0xe7   :  { %v156_v59 = vmax.f32 %v145_v50, 0.0  ;;  %v258_v60 = vmax.f32 %v246_v51, 0.0  ;;  %v149_v61 = vadd.f32 %v148_v57, %v63_v45  ;;  %v251_v62 = vpop.f32.mrb[7].mxu1  ;;  %268 = vadd.xlane.f32.xlu0 %v267_v42  ;;  %v250_v63 = vadd.f32 %v249_v56, %v63_v45 }
  0xe8   :  { %v259_v0 = vmax.f32 %v248_v55, 0.0  ;;  %v252_v1 = vadd.f32 %v251_v62, %v63_v45  ;;  %v157_v2 = vmax.f32 %v147_v58, 0.0 }
  0xe9   :  { %v158_v3 = vmax.f32 %v149_v61, 0.0  ;;  %v169_v4 = vadd.f32 %v156_v59, %v155_v54  ;;  %v260_v5 = vmax.f32 %v250_v63, 0.0  ;;  %v309_v54 = vld [vmem:[%s480_s3 + $0x18] sm:$0xff] }
  0xea   :  { %v261_v6 = vmax.f32 %v252_v1, 0.0  ;;  %v273_v7 = vadd.f32 %v259_v0, %v258_v60 }
  0xeb   :  { %170 = vadd.xlane.f32.xlu1 %v169_v4  ;;  %271 = vadd.xlane.f32.xlu0 %v270_v49  ;;  %v172_v8 = vadd.f32 %v158_v3, %v157_v2 }
  0xec   :  { %v276_v9 = vadd.f32 %v261_v6, %v260_v5 }
  0xef   :  { %173 = vadd.xlane.f32.xlu1 %v172_v8  ;;  %274 = vadd.xlane.f32.xlu0 %v273_v7 }
  0xf3   :  { %277 = vadd.xlane.f32.xlu0 %v276_v9 }
 0x170   :  { %v165_v12 = vpop.xlane.xlu0 %164 }
 0x171   :  { %v175_v14 = vadd.f32 %v165_v12, %v159_v11 }
 0x172   :  { %v168_v15 = vpop.xlane.xlu1 %167 }
 0x173   :  { %180 = vst.msk [vmem:[#allocation2] sm:$0xff] %vm27_vm2, %v175_v14  ;;  %v176_v17 = vadd.f32 %v168_v15, %v160_v13 }
 0x174   :  { %v269_v18 = vpop.xlane.xlu0 %268 }
 0x175   :  { %181 = vst.msk [vmem:[#allocation2 + $0x8] sm:$0xff] %vm27_vm2, %v176_v17  ;;  %v279_v19 = vadd.f32 %v269_v18, %v263_v16 }
 0x177   :  { %283 = vst.msk [vmem:[#allocation2 + $0x20] sm:$0xff] %vm27_vm2, %v279_v19 }
 0x178   :  { %v171_v22 = vpop.xlane.xlu1 %170  ;;  %v272_v23 = vpop.xlane.xlu0 %271 }
 0x179   :  { %v177_v24 = vadd.f32 %v171_v22, %v161_v20  ;;  %v280_v25 = vadd.f32 %v272_v23, %v264_v21  ;;  %v344_v21 = vld [vmem:[#allocation3] sm:$0x1] }
 0x17a   :  { %v290_v28 = vld [vmem:[#allocation2] sm:$0xff] }
 0x17b   :  { %182 = vst.msk [vmem:[#allocation2 + $0x10] sm:$0xff] %vm27_vm2, %v177_v24  ;;  %284 = vst.msk [vmem:[#allocation2 + $0x28] sm:$0xff] %vm27_vm2, %v280_v25  ;;  %v298_v35 = vmul.f32 0.00390625, %v290_v28 }
 0x17c   :  { %v291_v29 = vld [vmem:[#allocation2 + $0x8] sm:$0xff]  ;;  %v174_v30 = vpop.xlane.xlu1 %173  ;;  %v275_v31 = vpop.xlane.xlu0 %274 }
 0x17d   :  { %v299_v32 = vmul.f32 0.00390625, %v291_v29  ;;  %v178_v33 = vadd.f32 %v174_v30, %v162_v26  ;;  %v281_v34 = vadd.f32 %v275_v31, %v265_v27  ;;  %v310_v43 = vmul.f32 %v306_v38, %v298_v35 }
 0x17e   :  { %v294_v39 = vld [vmem:[#allocation2 + $0x20] sm:$0xff] }
 0x17f   :  { %183 = vst.msk [vmem:[#allocation2 + $0x18] sm:$0xff] %vm27_vm2, %v178_v33  ;;  %285 = vst.msk [vmem:[#allocation2 + $0x30] sm:$0xff] %vm27_vm2, %v281_v34  ;;  %v311_v41 = vmul.f32 %v307_v36, %v299_v32  ;;  %v302_v47 = vmul.f32 0.00390625, %v294_v39  ;;  %v318_v53 = vsel %vm27_vm2, %v310_v43, 0.0 }
 0x180   :  { %v278_v40 = vpop.xlane.xlu0 %277 }
 0x181   :  { %v282_v42 = vadd.f32 %v278_v40, %v266_v37  ;;  %v319_v50 = vsel %vm27_vm2, %v311_v41, 0.0  ;;  %v314_v57 = vmul.f32 %v306_v38, %v302_v47 }
 0x182   :  { %v292_v45 = vld [vmem:[#allocation2 + $0x10] sm:$0xff]  ;;  %v295_v46 = vld [vmem:[#allocation2 + $0x28] sm:$0xff]  ;;  %v320_v61 = vadd.f32 %v319_v50, %v318_v53 }
 0x183   :  { %v300_v48 = vmul.f32 0.00390625, %v292_v45  ;;  %v303_v49 = vmul.f32 0.00390625, %v295_v46  ;;  %286 = vst.msk [vmem:[#allocation2 + $0x38] sm:$0xff] %vm27_vm2, %v282_v42  ;;  %v331_v3 = vsel %vm27_vm2, %v314_v57, 0.0 }
 0x185   :  { %v312_v51 = vmul.f32 %v308_v44, %v300_v48  ;;  %v315_v52 = vmul.f32 %v307_v36, %v303_v49 }
 0x186   :  { %v293_v55 = vld [vmem:[#allocation2 + $0x18] sm:$0xff]  ;;  %v296_v56 = vld [vmem:[#allocation2 + $0x30] sm:$0xff] }
 0x187   :  { %v321_v58 = vsel %vm27_vm2, %v312_v51, 0.0  ;;  %v301_v59 = vmul.f32 0.00390625, %v293_v55  ;;  %v304_v60 = vmul.f32 0.00390625, %v296_v56  ;;  %v332_v62 = vsel %vm27_vm2, %v315_v52, 0.0 }
 0x188   :  { %v322_v1 = vadd.f32 %v321_v58, %v320_v61  ;;  %v333_v7 = vadd.f32 %v332_v62, %v331_v3 }
 0x189   :  { %v313_v63 = vmul.f32 %v309_v54, %v301_v59  ;;  %v316_v0 = vmul.f32 %v308_v44, %v304_v60 }
 0x18a   :  { %v297_v2 = vld [vmem:[#allocation2 + $0x38] sm:$0xff] }
 0x18b   :  { %v323_v4 = vsel %vm27_vm2, %v313_v63, 0.0  ;;  %v334_v5 = vsel %vm27_vm2, %v316_v0, 0.0  ;;  %v305_v6 = vmul.f32 0.00390625, %v297_v2 }
 0x18c   :  { %v324_v8 = vadd.f32 %v323_v4, %v322_v1  ;;  %v335_v11 = vadd.f32 %v334_v5, %v333_v7 }
 0x18d   :  { %v317_v9 = vmul.f32 %v309_v54, %v305_v6 }
 0x18e   :  { %v325_v10 = vrot.slane %v324_v8, 4 }
 0x18f   :  { %v336_v12 = vsel %vm27_vm2, %v317_v9, 0.0 }
 0x190   :  { %v326_v13 = vadd.f32 %v325_v10, %v324_v8  ;;  %v337_v14 = vadd.f32 %v336_v12, %v335_v11 }
 0x192   :  { %v327_v15 = vrot.slane %v326_v13, 2  ;;  %v338_v16 = vrot.slane %v337_v14, 4 }
 0x194   :  { %v328_v17 = vadd.f32 %v327_v15, %v326_v13  ;;  %v339_v18 = vadd.f32 %v338_v16, %v337_v14 }
 0x196   :  { %v329_v19 = vrot.slane %v328_v17, 1  ;;  %v340_v20 = vrot.slane %v339_v18, 2 }
 0x198   :  { %v330_v22 = vadd.f32 %v329_v19, %v328_v17  ;;  %v341_v23 = vadd.f32 %v340_v20, %v339_v18 }
 0x19a   :  { %v345_v24 = vadd.f32 %v344_v21, %v330_v22  ;;  %v342_v25 = vrot.slane %v341_v23, 1 }
 0x19c   :  { %348 = vst.msk [vmem:[%s481_s5] sm:$0x1] %vm347_vm3, %v345_v24  ;;  %v343_v26 = vadd.f32 %v342_v25, %v341_v23 }
 0x19e   :  { %v346_v27 = vadd.f32 %v344_v21, %v343_v26 }
 0x1a0   :  { %349 = vst.msk [vmem:[%s481_s5 + $0x1] sm:$0x1] %vm347_vm3, %v346_v27 }

</bundles_post_ra>
